<compile_context>
chip_gen: v7x
topology: tpu7x:2x2x1
jax: 0.10.0
libtpu: 0.0.40
codegen_flags: <defaults>
</compile_context>

<pallas_src>
import jax
import jax.numpy as jnp
from jax.experimental import pallas as pl
from jax.experimental.pallas import tpu as pltpu


def td3_critic1_kernel(state_ref, action_ref, w1a_ref, w1b_ref, b1_ref,
                       w2t_ref, b2_ref, q_ref):
    # Layer 1: [TB, Ds] @ [Ds, H] + [TB, Da] @ [Da, H] + b1   (fused "concat")
    h = (jnp.dot(state_ref[...], w1a_ref[...], preferred_element_type=jnp.float32)
         + jnp.dot(action_ref[...], w1b_ref[...], preferred_element_type=jnp.float32)
         + b1_ref[...])
    h = jnp.maximum(h, 0.0)
    # Layer 2 (output width 1): VPU multiply + cross-lane reduce, scalar bias
    # from SMEM.  Avoids a 1-column MXU matmul.
    q = jnp.sum(h * w2t_ref[...], axis=-1, keepdims=True) + b2_ref[0, 0]
    q_ref[...] = q.astype(q_ref.dtype)


def _pick_batch_tile(B):
    """Batch tile: multiples of 128/256/512 rows when they divide B, else one block."""
    for tb in (512, 256, 128):
        if B > tb and B % tb == 0:
            return tb
    return B  # single full-array block (always layout-legal)


def td3_critic1_forward(state, action, params):
    """state: [B, Ds], action: [B, Da]. Returns (q1, q2), each [B, 1] (q1 == q2)."""
    B, Ds = state.shape
    _, Da = action.shape
    w1, b1, w2, b2 = params["w1"], params["b1"], params["w2"], params["b2"]
    H = w1.shape[1]
    O = w2.shape[1]  # == 1

    # Tiny, trace-time weight reshapes (no per-row activation traffic):
    w1a = w1[:Ds, :]                      # [Ds, H]
    w1b = w1[Ds:, :]                      # [Da, H]
    w2t = w2.T                            # [O, H] == [1, H]
    b2s = b2.reshape(1, 1)                # scalar, goes to SMEM

    TB = _pick_batch_tile(B)
    grid = (pl.cdiv(B, TB),)

    vmem = lambda shape, imap: pl.BlockSpec(shape, imap, memory_space=pltpu.VMEM)

    q = pl.pallas_call(
        td3_critic1_kernel,
        out_shape=jax.ShapeDtypeStruct((B, O), jnp.float32),
        grid=grid,
        in_specs=[
            vmem((TB, Ds), lambda i: (i, 0)),   # state tile
            vmem((TB, Da), lambda i: (i, 0)),   # action tile
            vmem((Ds, H), lambda i: (0, 0)),    # w1 (state rows), VMEM-resident
            vmem((Da, H), lambda i: (0, 0)),    # w1 (action rows), VMEM-resident
            vmem((1, H),  lambda i: (0, 0)),    # b1
            vmem((1, H),  lambda i: (0, 0)),    # w2^T
            pl.BlockSpec((1, 1), lambda i: (0, 0), memory_space=pltpu.SMEM),  # b2
        ],
        out_specs=vmem((TB, O), lambda i: (i, 0)),
        compiler_params=pltpu.CompilerParams(
            dimension_semantics=("parallel",)),
    )(state, action, w1a, w1b, b1, w2t, b2s)

    # The reference forward() runs the same linear1/linear2 chain twice, so
    # q1 == q2; duplicate in the wrapper instead of recomputing on the MXU.
    return q, q


def init_params(key, input_size, hidden_size1, output_size=1):
    """Deterministic init mimicking nn.Linear (uniform +/- 1/sqrt(fan_in)).

    Weights stored as [in, out]; biases as [1, out].  linear3/linear4 are
    initialized for parity with __init__ but unused by forward(), exactly as
    in the reference module.
    """
    ks = jax.random.split(key, 8)
    def lin(kw, kb, fan_in, fan_out):
        bound = 1.0 / jnp.sqrt(jnp.float32(fan_in))
        w = jax.random.uniform(kw, (fan_in, fan_out), jnp.float32, -bound, bound)
        b = jax.random.uniform(kb, (1, fan_out), jnp.float32, -bound, bound)
        return w, b
    w1, b1 = lin(ks[0], ks[1], input_size, hidden_size1)
    w2, b2 = lin(ks[2], ks[3], hidden_size1, output_size)
    w3, b3 = lin(ks[4], ks[5], input_size, hidden_size1)   # unused in forward
    w4, b4 = lin(ks[6], ks[7], hidden_size1, output_size)  # unused in forward
    return {"w1": w1, "b1": b1, "w2": w2, "b2": b2,
            "w3": w3, "b3": b3, "w4": w4, "b4": b4}


def reference_forward(state, action, params):
    xu = jnp.concatenate([state, action], axis=1)
    h = jnp.maximum(xu @ params["w1"] + params["b1"], 0.0)
    x1 = h @ params["w2"] + params["b2"]
    return x1, x1


if __name__ == "__main__":
    key = jax.random.PRNGKey(0)
    k_state, k_action, k_params = jax.random.split(key, 3)

    batch = 2
    state_dim = 24
    action_dim = 8
    input_size = state_dim + action_dim     # 32
    hidden_size1 = 32
    output_size = 1

    state = jax.random.normal(k_state, (batch, state_dim), jnp.float32)
    action = jax.random.normal(k_action, (batch, action_dim), jnp.float32)
    params = init_params(k_params, input_size, hidden_size1, output_size)

    q1, q2 = td3_critic1_forward(state, action, params)
    q1 = jax.block_until_ready(q1)
    q2 = jax.block_until_ready(q2)

    r1, r2 = reference_forward(state, action, params)
    assert q1.shape == (batch, output_size) and q2.shape == (batch, output_size)
    assert jnp.allclose(q1, r1, atol=1e-5), "q1 mismatch vs reference"
    assert jnp.allclose(q2, r2, atol=1e-5), "q2 mismatch vs reference"

    print("KERNEL_OK")
</pallas_src>

<mosaic_0001>
module attributes {stable_mosaic.version = 11 : i64} {
  func.func @td3_critic1_kernel(%arg0: i32, %arg1: memref<2x24xf32, #tpu.memory_space<vmem>>, %arg2: memref<2x8xf32, #tpu.memory_space<vmem>>, %arg3: memref<24x32xf32, #tpu.memory_space<vmem>>, %arg4: memref<8x32xf32, #tpu.memory_space<vmem>>, %arg5: memref<1x32xf32, #tpu.memory_space<vmem>>, %arg6: memref<1x32xf32, #tpu.memory_space<vmem>>, %arg7: memref<1x1xf32, #tpu.memory_space<smem>>, %arg8: memref<2x1xf32, #tpu.memory_space<vmem>>) attributes {dimension_semantics = [#tpu.dimension_semantics<parallel>], iteration_bounds = array<i64: 1>, scalar_prefetch = 0 : i64, scratch_operands = 0 : i64, tpu.core_type = #tpu.core_type<tc>, window_params = [{transform_indices = @transform_0, window_bounds = array<i64: 2, 24>}, {transform_indices = @transform_1, window_bounds = array<i64: 2, 8>}, {pipeline_mode = #tpu.pipeline_mode<synchronous>, transform_indices = @transform_2, window_bounds = array<i64: 24, 32>}, {pipeline_mode = #tpu.pipeline_mode<synchronous>, transform_indices = @transform_3, window_bounds = array<i64: 8, 32>}, {pipeline_mode = #tpu.pipeline_mode<synchronous>, transform_indices = @transform_4, window_bounds = array<i64: 1, 32>}, {pipeline_mode = #tpu.pipeline_mode<synchronous>, transform_indices = @transform_5, window_bounds = array<i64: 1, 32>}, {transform_indices = @transform_6, window_bounds = array<i64: 1, 1>}, {transform_indices = @transform_7, window_bounds = array<i64: 2, 1>}]} {
    %c0 = arith.constant 0 : index
    %c0_0 = arith.constant 0 : index
    %0 = vector.load %arg1[%c0, %c0_0] : memref<2x24xf32, #tpu.memory_space<vmem>>, vector<2x24xf32>
    %c0_1 = arith.constant 0 : index
    %c0_2 = arith.constant 0 : index
    %1 = vector.load %arg3[%c0_1, %c0_2] : memref<24x32xf32, #tpu.memory_space<vmem>>, vector<24x32xf32>
    %cst = arith.constant dense<0.000000e+00> : vector<2x32xf32>
    %2 = tpu.matmul %0, %1, %cst {dimension_numbers = #tpu.dot_dimension_numbers<[1], [0], [0], [1], [0, 0, 1, 1], [], []>} : vector<2x24xf32>, vector<24x32xf32>, vector<2x32xf32> -> vector<2x32xf32>
    %c0_3 = arith.constant 0 : index
    %c0_4 = arith.constant 0 : index
    %3 = vector.load %arg2[%c0_3, %c0_4] : memref<2x8xf32, #tpu.memory_space<vmem>>, vector<2x8xf32>
    %c0_5 = arith.constant 0 : index
    %c0_6 = arith.constant 0 : index
    %4 = vector.load %arg4[%c0_5, %c0_6] : memref<8x32xf32, #tpu.memory_space<vmem>>, vector<8x32xf32>
    %cst_7 = arith.constant dense<0.000000e+00> : vector<2x32xf32>
    %5 = tpu.matmul %3, %4, %cst_7 {dimension_numbers = #tpu.dot_dimension_numbers<[1], [0], [0], [1], [0, 0, 1, 1], [], []>} : vector<2x8xf32>, vector<8x32xf32>, vector<2x32xf32> -> vector<2x32xf32>
    %6 = arith.addf %2, %5 : vector<2x32xf32>
    %c0_8 = arith.constant 0 : index
    %c0_9 = arith.constant 0 : index
    %7 = vector.load %arg5[%c0_8, %c0_9] : memref<1x32xf32, #tpu.memory_space<vmem>>, vector<1x32xf32>
    %8 = vector.broadcast %7 : vector<1x32xf32> to vector<2x32xf32>
    %9 = arith.addf %6, %8 : vector<2x32xf32>
    %cst_10 = arith.constant 0.000000e+00 : f32
    %10 = vector.broadcast %cst_10 : f32 to vector<2x32xf32>
    %11 = arith.maximumf %9, %10 : vector<2x32xf32>
    %c0_11 = arith.constant 0 : index
    %c0_12 = arith.constant 0 : index
    %12 = vector.load %arg6[%c0_11, %c0_12] : memref<1x32xf32, #tpu.memory_space<vmem>>, vector<1x32xf32>
    %13 = vector.broadcast %12 : vector<1x32xf32> to vector<2x32xf32>
    %14 = arith.mulf %11, %13 : vector<2x32xf32>
    %cst_13 = arith.constant dense<0.000000e+00> : vector<2xf32>
    %15 = vector.multi_reduction <add>, %14, %cst_13 [1] : vector<2x32xf32> to vector<2xf32>
    %16 = vector.shape_cast %15 : vector<2xf32> to vector<2x1xf32>
    %c0_14 = arith.constant 0 : index
    %c0_15 = arith.constant 0 : index
    %17 = memref.load %arg7[%c0_14, %c0_15] : memref<1x1xf32, #tpu.memory_space<smem>>
    %18 = vector.broadcast %17 : f32 to vector<2x1xf32>
    %19 = arith.addf %16, %18 : vector<2x1xf32>
    %c0_16 = arith.constant 0 : index
    %c0_17 = arith.constant 0 : index
    %20 = vector.load %arg8[%c0_16, %c0_17] : memref<2x1xf32, #tpu.memory_space<vmem>>, vector<2x1xf32>
    tpu.vector_store %arg8[%c0_16, %c0_17], %19 {strides = array<i32>} : memref<2x1xf32, #tpu.memory_space<vmem>>, vector<2x1xf32>,
    return
  }
  func.func @transform_0(%arg0: i32) -> (i32, i32) {
    %c0_i32 = arith.constant 0 : i32
    %c0_i32_0 = arith.constant 0 : i32
    return %arg0, %c0_i32 : i32, i32
  }
  func.func @transform_1(%arg0: i32) -> (i32, i32) {
    %c0_i32 = arith.constant 0 : i32
    %c0_i32_0 = arith.constant 0 : i32
    return %arg0, %c0_i32 : i32, i32
  }
  func.func @transform_2(%arg0: i32) -> (i32, i32) {
    %c0_i32 = arith.constant 0 : i32
    %c0_i32_0 = arith.constant 0 : i32
    %c0_i32_1 = arith.constant 0 : i32
    return %c0_i32, %c0_i32_0 : i32, i32
  }
  func.func @transform_3(%arg0: i32) -> (i32, i32) {
    %c0_i32 = arith.constant 0 : i32
    %c0_i32_0 = arith.constant 0 : i32
    %c0_i32_1 = arith.constant 0 : i32
    return %c0_i32, %c0_i32_0 : i32, i32
  }
  func.func @transform_4(%arg0: i32) -> (i32, i32) {
    %c0_i32 = arith.constant 0 : i32
    %c0_i32_0 = arith.constant 0 : i32
    %c0_i32_1 = arith.constant 0 : i32
    return %c0_i32, %c0_i32_0 : i32, i32
  }
  func.func @transform_5(%arg0: i32) -> (i32, i32) {
    %c0_i32 = arith.constant 0 : i32
    %c0_i32_0 = arith.constant 0 : i32
    %c0_i32_1 = arith.constant 0 : i32
    return %c0_i32, %c0_i32_0 : i32, i32
  }
  func.func @transform_6(%arg0: i32) -> (i32, i32) {
    %c0_i32 = arith.constant 0 : i32
    %c0_i32_0 = arith.constant 0 : i32
    %c0_i32_1 = arith.constant 0 : i32
    return %c0_i32, %c0_i32_0 : i32, i32
  }
  func.func @transform_7(%arg0: i32) -> (i32, i32) {
    %c0_i32 = arith.constant 0 : i32
    %c0_i32_0 = arith.constant 0 : i32
    return %arg0, %c0_i32 : i32, i32
  }
}

</mosaic_0001>

<bundles_post_ra>
// kernel: tpu_custom_call.1
= control target key start
LH: loop header
LB: loop body
LE: loop exit
PB: predicated region body
PF: predicated region fallthrough
CT: control target
= control target key end

     0   :  { %13 = vsyncpa [#allocation4], 0  ;;  %s283_s24 = smov [#allocation3]   ;;  %s362_s0 = inlined_call_operand.vmem [shape: f32[2,24], index: 0, kind: input, shape index: {}]   ;;  %s363_s1 = inlined_call_operand.vmem [shape: f32[2,8], index: 1, kind: input, shape index: {}]   ;;  %s364_s2 = inlined_call_operand.hbm [shape: f32[24,32], index: 2, kind: input, shape index: {}]   ;;  %s365_s3 = inlined_call_operand.vmem [shape: f32[8,32], index: 3, kind: input, shape index: {}]   ;;  %s366_s4 = inlined_call_operand.vmem [shape: f32[1,32], index: 4, kind: input, shape index: {}]   ;;  %s367_s5 = inlined_call_operand.vmem [shape: f32[1,32], index: 5, kind: input, shape index: {}]   ;;  %s368_s6 = inlined_call_operand.<no memory space> [shape: f32[1,1], index: 6, kind: input, shape index: {}]   ;;  %s369_s7 = inlined_call_operand.vmem [shape: f32[2,1], index: 7, kind: output, shape index: {}]  }
   0x1   :  { %s23_s25 = sshll.u32 %s283_s24, 4  ;;  %s259_s28 = scalar_lea.hbm %s364_s2, 384  ;;  %s24_s25 = int_to_ptr.vmem [resolvable:$true] %s23_s25 }
   0x2   :  { %p260_p0 = scmp.ne.s32.totalorder %s364_s2, %s259_s28  ;;  %p263_p1 = scmp.lt.u32.totalorder %s259_s28, %s364_s2 }
   0x4   :  { %p265_p2 = pnand %p263_p1, %p260_p0 }
   0x6   :  { %268 = shalt.err (!%p265_p2)
}
   0x7   :  { %s269_s10 = scalar_lea.vmem %s24_s25, 384  ;;  %p274_p4 = scmp.lt.s32.totalorder %s24_s25, %s24_s25 }
   0x8   :  { %p270_p3 = scmp.ne.s32.totalorder %s24_s25, %s269_s10  ;;  %p275_p5 = scmp.lt.s32.totalorder %s269_s10, %s269_s10 }
   0xa   :  { %p276_p6 = por %p275_p5, %p274_p4 }
   0xc   :  { %p277_p7 = pnand %p276_p6, %p270_p3 }
   0xe   :  { %280 = shalt.err (!%p277_p7)
}
   0xf   :  { %s284_s11 = smov 128   ;;  %s285_s12 = smov 8  }
  0x10   :  { %29 = dma.hbm_to_vmem [thread:$0]  %s364_s2, 384, %s24_s25, [#allocation4], %s284_s11, %s284_s11, %s285_s12  }
  0x11   :  { %281 = dma.done.wait [#allocation4], 384  }
  0x12   :  { %282 = vsyncadd [#allocation4], 4294966912  ;;  %v286_v0 = vmov 0.0|0.0   ;;  %v287_v1 = vmov 0.0   ;;  %vm288_vm0 = vmmov 0   ;;  %vm47_vm1 = vcmask 64512  }
  0x13   :  { %250 = vmatprep.subr.bf16.mxu1 %v286_v0  ;;  %236 = vmatprep.subr.mxu0 %v287_v1  ;;  %v42_v2 = vld [vmem:[#allocation3] sm:$0xff]  ;;  %v43_v3 = vld [vmem:[#allocation3 + $0x8] sm:$0xff]  ;;  %v44_v7 = vld [vmem:[#allocation3 + $0x10] sm:$0xff]  ;;  %vm121_vm2 = vcmask 195584   ;;  %vm212_vm3 = vcmask 254976   ;;  %v217_v20 = vstv %s368_s6  ;;  %vm219_vm4 = vcmask 1024  }
  0x14   :  { %238 = vmatprep.mubr.msk.f32.mxu0 %vm288_vm0, %v287_v1  ;;  %247 = vmatprep.mubr.msk.f32.mxu1 %vm288_vm0, %v287_v1  ;;  %v46_v4 = vld [vmem:[%s365_s3] sm:$0xff]  ;;  %v251_v5 = vpack.c.bf16 %v43_v3, %v42_v2 }
  0x15   :  { %237 = vmatpush3.msra.mxu0 %v46_v4  ;;  %v45_v6 = vld [vmem:[%s363_s1] sm:$0x3] }
  0x16   :  { %239 = vmatmul.mubr.msk.f32.vlgmr.msra.gmra.mrb[0].mxu0 %vm47_vm1, %v45_v6  ;;  %252 = vmatpush3.bf16.msra.mxu1 %v251_v5  ;;  %v41_v8 = vld [vmem:[%s362_s0] sm:$0x3] }
  0x17   :  { %245 = vmatprep.subr.mxu1 %v287_v1  ;;  %v228_v12 = vld [vmem:[%s366_s4] ss:$0 sm:$0xff] }
  0x18   :  { %v229_v16 = vld [vmem:[%s367_s5] ss:$0 sm:$0xff] }
  0x1a   :  { %246 = vmatpush3.msra.mxu1 %v44_v7 }
  0x1b   :  { %248 = vmatmul.mubr.msk.f32.vlgmr.msra.gmra.mrb[0].mxu1 %vm121_vm2, %v41_v8 }
  0xe9   :  { %v117_v9 = vpop.f32.mrb[0].mxu0 }
  0xea   :  { %v240_v10 = vpop.f32.mrb[1].mxu0 }
  0xee   :  { %v191_v11 = vpop.f32.mrb[0].mxu1 }
  0xef   :  { %v192_v13 = vadd.f32 %v191_v11, %v117_v9  ;;  %v249_v14 = vpop.f32.mrb[1].mxu1 }
  0xf1   :  { %v202_v15 = vadd.f32 %v228_v12, %v192_v13 }
  0xf3   :  { %v203_v17 = vmax.f32 %v202_v15, 0.0 }
  0xf5   :  { %v211_v18 = vmul.f32 %v229_v16, %v203_v17 }
  0xf7   :  { %v213_v19 = vsel %vm212_vm3, %v211_v18, 0.0 }
  0xf8   :  { %214 = vadd.xlane.f32.xlu0 %v213_v19 }
 0x185   :  { %v215_v21 = vpop.xlane.xlu0 %214 }
 0x186   :  { %v218_v22 = vadd.f32 %v217_v20, %v215_v21 }
 0x188   :  { %220 = vst.msk [vmem:[%s369_s7] sm:$0x3] %vm219_vm4, %v218_v22 }
 0x189   :  { %225 = vsyncpa [#allocation4], 1 }

</bundles_post_ra>
